<compile_context>
chip_gen: v7x
topology: tpu7x:2x2x1
jax: 0.10.0
libtpu: 0.0.40
codegen_flags: <defaults>
</compile_context>

<pallas_src>
import jax
import jax.numpy as jnp
from jax.experimental import pallas as pl
from jax.experimental.pallas import tpu as pltpu

LANES = 128
SUBLANES = 8
MAX_BLOCK_ROWS = 2048  # (2048, 128) f32 = 1 MiB per input block


def _make_dice_kernel(rows, block_rows, blocks_per_core, needs_mask):
    """Builds the kernel with all tiling parameters baked in as constants."""

    def kernel(o_ref, t_ref, out_ref, acc_ot, acc_tt):
        p = pl.program_id(0)   # parallel axis (per-core slice of the rows)
        j = pl.program_id(1)   # sequential reduction axis

        @pl.when(j == 0)
        def _():
            acc_ot[...] = jnp.zeros_like(acc_ot)
            acc_tt[...] = jnp.zeros_like(acc_tt)

        o = o_ref[...].astype(jnp.float32)
        t = t_ref[...].astype(jnp.float32)
        ot = o * t
        tt = t * t

        if needs_mask:
            # Zero out rows beyond the valid range (partial last block and/or
            # the clamped duplicate block of the second core).
            logical_blk = p * blocks_per_core + j
            row_ids = logical_blk * block_rows + jax.lax.broadcasted_iota(
                jnp.int32, o.shape, 0)
            valid = row_ids < rows
            ot = jnp.where(valid, ot, 0.0)
            tt = jnp.where(valid, tt, 0.0)

        # Cheap VPU adds that hide under the input DMA.
        acc_ot[...] += ot
        acc_tt[...] += tt

        # Single reduction at the very end of each core's sequential loop.
        @pl.when(j == pl.num_programs(1) - 1)
        def _():
            part = jnp.concatenate(
                [jnp.sum(acc_ot[...], axis=0, keepdims=True),
                 jnp.sum(acc_tt[...], axis=0, keepdims=True)],
                axis=0)                       # (2, 128) per-lane partials
            out_ref[...] = part[None]         # (1, 2, 128)

    return kernel


def dice_loss(output: jax.Array, target: jax.Array) -> jax.Array:
    """Pallas implementation of diceLoss.forward (returns a scalar f32)."""
    assert output.shape == target.shape, \
        "output/target must match (PyTorch view(-1) semantics)"

    smooth = jnp.float32(1.0)
    o_flat = output.reshape(-1)
    t_flat = target.reshape(-1)
    n = o_flat.shape[0]
    rows = n // LANES

    if rows == 0:
        # Tiny input (< 128 elements): nothing lane-aligned for the kernel.
        iflat = o_flat.astype(jnp.float32)
        tflat = t_flat.astype(jnp.float32)
        inter = jnp.sum(iflat * tflat)
        bsum = jnp.sum(tflat * tflat)
        return 1.0 - (2.0 * inter + smooth) / (inter + bsum + smooth)

    n_main = rows * LANES

    # Ragged tail (< 128 elements, empty for typical NCHW shapes) in plain JAX.
    tail_o = o_flat[n_main:].astype(jnp.float32)
    tail_t = t_flat[n_main:].astype(jnp.float32)
    tail_inter = jnp.sum(tail_o * tail_t)
    tail_bsum = jnp.sum(tail_t * tail_t)

    # Lane-dense view of the aligned prefix (no pad, no dtype cast -> no extra
    # HBM copies; f32 accumulation happens inside the kernel).
    o2 = o_flat[:n_main].reshape(rows, LANES)
    t2 = t_flat[:n_main].reshape(rows, LANES)

    if rows <= MAX_BLOCK_ROWS:
        block_rows = rows              # block == full dim: no (8) divisibility needed
    else:
        block_rows = MAX_BLOCK_ROWS    # multiple of 8

    nblocks = -(-rows // block_rows)
    ncores = 2 if nblocks >= 2 else 1  # split across both TCs on v7x
    blocks_per_core = -(-nblocks // ncores)

    needs_clamp = (blocks_per_core * ncores != nblocks)
    needs_mask = (rows % block_rows != 0) or needs_clamp

    def in_index_map(p, j):
        blk = p * blocks_per_core + j
        if needs_clamp:
            blk = jnp.minimum(blk, nblocks - 1)   # keep DMA in bounds; mask zeroes it
        return (blk, 0)

    partials = pl.pallas_call(
        _make_dice_kernel(rows, block_rows, blocks_per_core, needs_mask),
        out_shape=jax.ShapeDtypeStruct((ncores, 2, LANES), jnp.float32),
        grid_spec=pltpu.PrefetchScalarGridSpec(
            num_scalar_prefetch=0,
            grid=(ncores, blocks_per_core),
            in_specs=[
                pl.BlockSpec((block_rows, LANES), in_index_map),
                pl.BlockSpec((block_rows, LANES), in_index_map),
            ],
            out_specs=pl.BlockSpec((1, 2, LANES), lambda p, j: (p, 0, 0)),
            scratch_shapes=[
                pltpu.VMEM((block_rows, LANES), jnp.float32),  # acc of o*t
                pltpu.VMEM((block_rows, LANES), jnp.float32),  # acc of t*t
            ],
        ),
        compiler_params=pltpu.CompilerParams(
            dimension_semantics=("parallel", "arbitrary"),
        ),
    )(o2, t2)

    intersection = jnp.sum(partials[:, 0, :]) + tail_inter
    b_sum = jnp.sum(partials[:, 1, :]) + tail_bsum
    a_sum = intersection  # sum(t*o) == sum(o*t), as in the PyTorch code
    return 1.0 - (2.0 * intersection + smooth) / (a_sum + b_sum + smooth)


def dice_loss_ref(output, target):
    """Pure-JAX reference matching the PyTorch code."""
    smooth = 1.0
    iflat = output.reshape(-1).astype(jnp.float32)
    tflat = target.reshape(-1).astype(jnp.float32)
    intersection = jnp.sum(iflat * tflat)
    a_sum = jnp.sum(tflat * iflat)
    b_sum = jnp.sum(tflat * tflat)
    return 1.0 - (2.0 * intersection + smooth) / (a_sum + b_sum + smooth)


if __name__ == "__main__":
    key = jax.random.PRNGKey(0)
    k1, k2 = jax.random.split(key)

    # Small NCHW-like shapes consistent with a segmentation loss.
    output = jax.nn.sigmoid(jax.random.normal(k1, (2, 4, 16, 16), dtype=jnp.float32))
    target = (jax.random.uniform(k2, (2, 4, 16, 16)) > 0.5).astype(jnp.float32)

    loss = jax.block_until_ready(dice_loss(output, target))
    ref = jax.block_until_ready(dice_loss_ref(output, target))

    assert jnp.allclose(loss, ref, rtol=1e-5, atol=1e-5), (loss, ref)
    print("KERNEL_OK")
</pallas_src>

<mosaic_0001>
module attributes {stable_mosaic.version = 11 : i64} {
  func.func @kernel(%arg0: i32, %arg1: i32, %arg2: memref<16x128xf32, #tpu.memory_space<vmem>>, %arg3: memref<16x128xf32, #tpu.memory_space<vmem>>, %arg4: memref<1x2x128xf32, #tpu.memory_space<vmem>>, %arg5: memref<16x128xf32, #tpu.memory_space<vmem>>, %arg6: memref<16x128xf32, #tpu.memory_space<vmem>>) attributes {dimension_semantics = [#tpu.dimension_semantics<parallel>, #tpu.dimension_semantics<arbitrary>], iteration_bounds = array<i64: 1, 1>, scalar_prefetch = 0 : i64, scratch_operands = 2 : i64, tpu.core_type = #tpu.core_type<tc>, window_params = [{transform_indices = @transform_0, window_bounds = array<i64: 16, 128>}, {transform_indices = @transform_1, window_bounds = array<i64: 16, 128>}, {transform_indices = @transform_2, window_bounds = array<i64: 1, 2, 128>}]} {
    %c0_i32 = arith.constant 0 : i32
    %0 = arith.cmpi eq, %arg1, %c0_i32 : i32
    %1 = arith.extui %0 : i1 to i32
    %c0_i32_0 = arith.constant 0 : i32
    %2 = arith.cmpi ne, %1, %c0_i32_0 : i32
    scf.if %2 {
      %cst = arith.constant 0.000000e+00 : f32
      %16 = vector.broadcast %cst : f32 to vector<16x128xf32>
      %c0_14 = arith.constant 0 : index
      %c0_15 = arith.constant 0 : index
      %17 = vector.load %arg5[%c0_14, %c0_15] : memref<16x128xf32, #tpu.memory_space<vmem>>, vector<16x128xf32>
      tpu.vector_store %arg5[%c0_14, %c0_15], %16 {strides = array<i32>} : memref<16x128xf32, #tpu.memory_space<vmem>>, vector<16x128xf32>,
      %cst_16 = arith.constant 0.000000e+00 : f32
      %18 = vector.broadcast %cst_16 : f32 to vector<16x128xf32>
      %c0_17 = arith.constant 0 : index
      %c0_18 = arith.constant 0 : index
      %19 = vector.load %arg6[%c0_17, %c0_18] : memref<16x128xf32, #tpu.memory_space<vmem>>, vector<16x128xf32>
      tpu.vector_store %arg6[%c0_17, %c0_18], %18 {strides = array<i32>} : memref<16x128xf32, #tpu.memory_space<vmem>>, vector<16x128xf32>,
    } else {
    }
    %c0 = arith.constant 0 : index
    %c0_1 = arith.constant 0 : index
    %3 = vector.load %arg2[%c0, %c0_1] : memref<16x128xf32, #tpu.memory_space<vmem>>, vector<16x128xf32>
    %c0_2 = arith.constant 0 : index
    %c0_3 = arith.constant 0 : index
    %4 = vector.load %arg3[%c0_2, %c0_3] : memref<16x128xf32, #tpu.memory_space<vmem>>, vector<16x128xf32>
    %5 = arith.mulf %3, %4 : vector<16x128xf32>
    %6 = arith.mulf %4, %4 : vector<16x128xf32>
    %c0_4 = arith.constant 0 : index
    %c0_5 = arith.constant 0 : index
    %7 = vector.load %arg5[%c0_4, %c0_5] : memref<16x128xf32, #tpu.memory_space<vmem>>, vector<16x128xf32>
    %8 = arith.addf %7, %5 : vector<16x128xf32>
    %c0_6 = arith.constant 0 : index
    %c0_7 = arith.constant 0 : index
    %9 = vector.load %arg5[%c0_6, %c0_7] : memref<16x128xf32, #tpu.memory_space<vmem>>, vector<16x128xf32>
    tpu.vector_store %arg5[%c0_6, %c0_7], %8 {strides = array<i32>} : memref<16x128xf32, #tpu.memory_space<vmem>>, vector<16x128xf32>,
    %c0_8 = arith.constant 0 : index
    %c0_9 = arith.constant 0 : index
    %10 = vector.load %arg6[%c0_8, %c0_9] : memref<16x128xf32, #tpu.memory_space<vmem>>, vector<16x128xf32>
    %11 = arith.addf %10, %6 : vector<16x128xf32>
    %c0_10 = arith.constant 0 : index
    %c0_11 = arith.constant 0 : index
    %12 = vector.load %arg6[%c0_10, %c0_11] : memref<16x128xf32, #tpu.memory_space<vmem>>, vector<16x128xf32>
    tpu.vector_store %arg6[%c0_10, %c0_11], %11 {strides = array<i32>} : memref<16x128xf32, #tpu.memory_space<vmem>>, vector<16x128xf32>,
    %c0_i32_12 = arith.constant 0 : i32
    %13 = arith.cmpi eq, %arg1, %c0_i32_12 : i32
    %14 = arith.extui %13 : i1 to i32
    %c0_i32_13 = arith.constant 0 : i32
    %15 = arith.cmpi ne, %14, %c0_i32_13 : i32
    scf.if %15 {
      %c0_14 = arith.constant 0 : index
      %c0_15 = arith.constant 0 : index
      %16 = vector.load %arg5[%c0_14, %c0_15] : memref<16x128xf32, #tpu.memory_space<vmem>>, vector<16x128xf32>
      %cst = arith.constant dense<0.000000e+00> : vector<128xf32>
      %17 = vector.multi_reduction <add>, %16, %cst [0] : vector<16x128xf32> to vector<128xf32>
      %18 = vector.shape_cast %17 : vector<128xf32> to vector<1x128xf32>
      %c0_16 = arith.constant 0 : index
      %c0_17 = arith.constant 0 : index
      %19 = vector.load %arg6[%c0_16, %c0_17] : memref<16x128xf32, #tpu.memory_space<vmem>>, vector<16x128xf32>
      %cst_18 = arith.constant dense<0.000000e+00> : vector<128xf32>
      %20 = vector.multi_reduction <add>, %19, %cst_18 [0] : vector<16x128xf32> to vector<128xf32>
      %21 = vector.shape_cast %20 : vector<128xf32> to vector<1x128xf32>
      %22 = tpu.concatenate %18, %21 in 0 : vector<1x128xf32>, vector<1x128xf32> -> vector<2x128xf32>
      %23 = vector.shape_cast %22 : vector<2x128xf32> to vector<1x2x128xf32>
      %c0_19 = arith.constant 0 : index
      %c0_20 = arith.constant 0 : index
      %c0_21 = arith.constant 0 : index
      %24 = vector.load %arg4[%c0_19, %c0_20, %c0_21] : memref<1x2x128xf32, #tpu.memory_space<vmem>>, vector<1x2x128xf32>
      tpu.vector_store %arg4[%c0_19, %c0_20, %c0_21], %23 {strides = array<i32>} : memref<1x2x128xf32, #tpu.memory_space<vmem>>, vector<1x2x128xf32>,
    } else {
    }
    return
  }
  func.func @transform_0(%arg0: i32, %arg1: i32) -> (i32, i32) {
    %c1_i32 = arith.constant 1 : i32
    %0 = arith.muli %arg0, %c1_i32 : i32
    %1 = arith.addi %0, %arg1 : i32
    %c0_i32 = arith.constant 0 : i32
    %c0_i32_0 = arith.constant 0 : i32
    return %1, %c0_i32 : i32, i32
  }
  func.func @transform_1(%arg0: i32, %arg1: i32) -> (i32, i32) {
    %c1_i32 = arith.constant 1 : i32
    %0 = arith.muli %arg0, %c1_i32 : i32
    %1 = arith.addi %0, %arg1 : i32
    %c0_i32 = arith.constant 0 : i32
    %c0_i32_0 = arith.constant 0 : i32
    return %1, %c0_i32 : i32, i32
  }
  func.func @transform_2(%arg0: i32, %arg1: i32) -> (i32, i32, i32) {
    %c0_i32 = arith.constant 0 : i32
    %c0_i32_0 = arith.constant 0 : i32
    %c0_i32_1 = arith.constant 0 : i32
    return %arg0, %c0_i32, %c0_i32_0 : i32, i32, i32
  }
}

</mosaic_0001>

<bundles_post_ra>
// kernel: tpu_custom_call.1
= control target key start
LH: loop header
LB: loop body
LE: loop exit
PB: predicated region body
PF: predicated region fallthrough
CT: control target
= control target key end

     0   :  { %7 = vsyncpa [#allocation5], 0  ;;  %s253_s0 = inlined_call_operand.hbm [shape: f32[16,128], index: 0, kind: input, shape index: {}]   ;;  %s254_s1 = inlined_call_operand.hbm [shape: f32[16,128], index: 1, kind: input, shape index: {}]   ;;  %s255_s2 = inlined_call_operand.hbm [shape: f32[1,2,128], index: 2, kind: output, shape index: {}]  }
   0x1   :  { %8 = vsyncpa [#allocation8], 0 }
   0x2   :  { %9 = vsyncpa [#allocation6], 0  ;;  %s197_s9 = smov [#allocation4]   ;;  %s125_s13 = scalar_lea.hbm %s253_s0, 256 }
   0x3   :  { %s19_s10 = sshll.u32 %s197_s9, 4  ;;  %p126_p0 = scmp.ne.s32.totalorder %s253_s0, %s125_s13  ;;  %s20_s10 = int_to_ptr.vmem [resolvable:$true] %s19_s10 }
   0x4   :  { %p129_p1 = scmp.lt.u32.totalorder %s125_s13, %s253_s0 }
   0x6   :  { %p131_p2 = pnand %p129_p1, %p126_p0 }
   0x8   :  { %134 = shalt.err (!%p131_p2)
}
   0x9   :  { %s135_s18 = scalar_lea.vmem %s20_s10, 256  ;;  %p140_p4 = scmp.lt.s32.totalorder %s20_s10, %s20_s10 }
   0xa   :  { %p136_p3 = scmp.ne.s32.totalorder %s20_s10, %s135_s18  ;;  %p141_p5 = scmp.lt.s32.totalorder %s135_s18, %s135_s18 }
   0xc   :  { %p142_p6 = por %p141_p5, %p140_p4 }
   0xe   :  { %p143_p7 = pnand %p142_p6, %p136_p3 }
  0x10   :  { %146 = shalt.err (!%p143_p7)
}
  0x11   :  { %s198_s19 = smov 128   ;;  %s199_s20 = smov 8  }
  0x12   :  { %25 = dma.hbm_to_vmem [thread:$0]  %s253_s0, 256, %s20_s10, [#allocation5], %s198_s19, %s198_s19, %s199_s20  }
  0x13   :  { %s200_s23 = smov [#allocation7]   ;;  %s147_s27 = scalar_lea.hbm %s254_s1, 256 }
  0x14   :  { %s35_s24 = sshll.u32 %s200_s23, 4  ;;  %p148_p8 = scmp.ne.s32.totalorder %s254_s1, %s147_s27  ;;  %s36_s24 = int_to_ptr.vmem [resolvable:$true] %s35_s24 }
  0x15   :  { %p151_p9 = scmp.lt.u32.totalorder %s147_s27, %s254_s1 }
  0x17   :  { %p153_p10 = pnand %p151_p9, %p148_p8 }
  0x19   :  { %156 = shalt.err (!%p153_p10)
}
  0x1a   :  { %s157_s4 = scalar_lea.vmem %s36_s24, 256  ;;  %p162_p12 = scmp.lt.s32.totalorder %s36_s24, %s36_s24 }
  0x1b   :  { %p158_p11 = scmp.ne.s32.totalorder %s36_s24, %s157_s4  ;;  %p163_p13 = scmp.lt.s32.totalorder %s157_s4, %s157_s4 }
  0x1d   :  { %p164_p0 = por %p163_p13, %p162_p12 }
  0x1f   :  { %p165_p1 = pnand %p164_p0, %p158_p11 }
  0x21   :  { %168 = shalt.err (!%p165_p1)
}
  0x22   :  { %41 = dma.hbm_to_vmem [thread:$0]  %s254_s1, 256, %s36_s24, [#allocation8], %s198_s19, %s198_s19, %s199_s20  }
  0x23   :  { %191 = dma.done.wait [#allocation5], 256  }
  0x24   :  { %192 = vsyncadd [#allocation5], 4294967040 }
  0x25   :  { %193 = dma.done.wait [#allocation8], 256  }
  0x26   :  { %194 = vsyncadd [#allocation8], 4294967040  ;;  %v60_v0 = vld [vmem:[#allocation4] sm:$0xff]  ;;  %v61_v1 = vld [vmem:[#allocation4 + $0x8] sm:$0xff]  ;;  %s201_s1 = smov [#allocation9]   ;;  %vm101_vm0 = vcmask 1040384  }
  0x27   :  { %v62_v2 = vld [vmem:[#allocation7] sm:$0xff]  ;;  %v63_v3 = vld [vmem:[#allocation7 + $0x8] sm:$0xff]  ;;  %s110_s6 = sshll.u32 %s201_s1, 4  ;;  %s111_s6 = int_to_ptr.vmem [resolvable:$true] %s110_s6 }
  0x28   :  { %v64_v4 = vmul.f32 %v62_v2, %v60_v0  ;;  %v66_v5 = vmul.f32 %v62_v2, %v62_v2  ;;  %v65_v6 = vmul.f32 %v63_v3, %v61_v1  ;;  %v67_v7 = vmul.f32 %v63_v3, %v63_v3  ;;  %s169_s7 = scalar_lea.vmem %s111_s6, 32  ;;  %p174_p3 = scmp.lt.s32.totalorder %s111_s6, %s111_s6 }
  0x29   :  { %p170_p2 = scmp.ne.s32.totalorder %s111_s6, %s169_s7  ;;  %p175_p4 = scmp.lt.s32.totalorder %s169_s7, %s169_s7 }
  0x2a   :  { %v85_v8 = vadd.f32 %v65_v6, %v64_v4  ;;  %v94_v9 = vadd.f32 %v67_v7, %v66_v5 }
  0x2b   :  { %p176_p5 = por %p175_p4, %p174_p3 }
  0x2c   :  { %v86_v10 = vrot.slane %v85_v8, 4  ;;  %v95_v11 = vrot.slane %v94_v9, 4 }
  0x2d   :  { %p177_p6 = pnand %p176_p5, %p170_p2 }
  0x2e   :  { %v87_v12 = vadd.f32 %v86_v10, %v85_v8  ;;  %v96_v13 = vadd.f32 %v95_v11, %v94_v9 }
  0x30   :  { %v88_v14 = vrot.slane %v87_v12, 2  ;;  %v97_v15 = vrot.slane %v96_v13, 2 }
  0x32   :  { %v89_v16 = vadd.f32 %v88_v14, %v87_v12  ;;  %v98_v17 = vadd.f32 %v97_v15, %v96_v13 }
  0x34   :  { %v90_v18 = vrot.slane %v89_v16, 1  ;;  %v99_v19 = vrot.slane %v98_v17, 1 }
  0x36   :  { %v91_v20 = vadd.f32 %v90_v18, %v89_v16  ;;  %v100_v21 = vadd.f32 %v99_v19, %v98_v17 }
  0x38   :  { %v102_v22 = vsel %vm101_vm0, %v91_v20, %v100_v21 }
  0x39   :  { %103 = vst [vmem:[#allocation9] sm:$0x3] %v102_v22 }
  0x3a   :  { %180 = shalt.err (!%p177_p6)
}
  0x3b   :  { %s181_s10 = scalar_lea.hbm %s255_s2, 32 }
  0x3c   :  { %p182_p7 = scmp.ne.s32.totalorder %s255_s2, %s181_s10  ;;  %p185_p8 = scmp.lt.u32.totalorder %s181_s10, %s255_s2 }
  0x3e   :  { %p187_p9 = pnand %p185_p8, %p182_p7 }
  0x40   :  { %190 = shalt.err (!%p187_p9)
}
  0x41   :  { %113 = dma.vmem_to_hbm [thread:$0]  %s111_s6, 32, %s255_s2, [#allocation6]  }
  0x42   :  { %195 = dma.done.wait [#allocation6], 32  }
  0x43   :  { %196 = vsyncadd [#allocation6], 4294967264 }
  0x44   :  { %117 = vsyncpa [#allocation5], 1 }
  0x45   :  { %118 = vsyncpa [#allocation8], 1 }
  0x46   :  { %119 = vsyncpa [#allocation6], 1 }

</bundles_post_ra>
